<compile_context>
chip_gen: v7x
topology: tpu7x:2x2x1
jax: 0.10.0
libtpu: 0.0.40
codegen_flags: <defaults>
</compile_context>

<pallas_src>
import functools

import jax
import jax.numpy as jnp
from jax.experimental import pallas as pl
from jax.experimental.pallas import tpu as pltpu


def _round_up(x, m):
    return ((x + m - 1) // m) * m


def _device_kind():
    try:
        return jax.devices()[0].device_kind.lower()
    except Exception:
        return ""


def _auto_num_tensorcores(kind):
    # v5e / v6e: 1 TensorCore.  v4 / v5p (megacore) and v7x: 2 TensorCores.
    if "lite" in kind or "v5e" in kind or "v6" in kind:
        return 1
    if "v4" in kind or "v5" in kind or "v7" in kind:
        return 2
    return 1


def _ce_kernel(logits_ref, target_ref, out_ref, col_ref, *,
               n_rows, tiles_per_core, tile_m, num_tiles, two_d, need_guard):
    # logits_ref: (TM, C) native dtype, target_ref: (TM, 1) i32,
    # out_ref:    (8, 128) f32 resident per-core partial-sum accumulator,
    # col_ref:    (TM, C) i32 VMEM scratch holding the column indices.
    if two_d:
        c = pl.program_id(0)
        j = pl.program_id(1)
        tile_id = c * tiles_per_core + j
        first = j == 0
    else:
        tile_id = pl.program_id(0)
        first = tile_id == 0

    @pl.when(first)
    def _():
        out_ref[...] = jnp.zeros_like(out_ref)
        # Grid-invariant column-index tensor: build once, re-load (vld) on
        # every later step instead of re-running the iota on the VALU.
        col_ref[...] = jax.lax.broadcasted_iota(jnp.int32, col_ref.shape, 1)

    def body():
        x = logits_ref[...]            # (TM, C) native dtype (bf16 stays bf16)
        t = target_ref[...]            # (TM, 1) int32
        col = col_ref[...]             # (TM, C) int32

        # One sweep for max + target pick on raw x (pick does not depend on
        # the shifted tile), one sweep for exp.
        m = jnp.max(x, axis=-1, keepdims=True)                        # (TM, 1)
        picked = jnp.sum(jnp.where(col == t, x, 0.0),
                         axis=-1, keepdims=True)                      # (TM, 1)
        # Subtract in native dtype; upcast only for exp / f32 accumulation.
        sumexp = jnp.sum(jnp.exp((x - m).astype(jnp.float32)),
                         axis=-1, keepdims=True)                      # (TM, 1)

        nll = (m.astype(jnp.float32) - picked.astype(jnp.float32)) \
            + jnp.log(sumexp)                                         # (TM, 1)

        # Mask rows past N.  Keep this as a SELECT, not a multiply: garbage
        # rows of the trailing partial tile may hold Inf/NaN.
        row0 = tile_id * tile_m
        rows = row0 + jax.lax.broadcasted_iota(jnp.int32, (tile_m, 1), 0)
        nll = jnp.where(rows < n_rows, nll, 0.0)

        out_ref[...] += jnp.sum(nll)

    if need_guard:
        # Clamped overflow tiles (num_tiles % num_cores != 0): DMA happens
        # but all compute is skipped.
        pl.when(tile_id < num_tiles)(body)
    else:
        body()


def cross_entropy_loss(logits, target, *, tile_m=None, num_cores=None):
    """Mean cross-entropy == F.cross_entropy(logits, target, weight=None)."""
    N, C = logits.shape
    itemsize = jnp.dtype(logits.dtype).itemsize
    kind = _device_kind()
    is_v7 = "v7" in kind

    # Sublane packing for the logits dtype: f32 -> 8, bf16 -> 16, int8 -> 32.
    pack = max(8, 8 * (4 // max(1, itemsize)))

    # Per-row VMEM working-set bytes:
    #   2x double-buffered logits row  +  iota scratch row (int32)
    #   + 2x lane-padded (.,1)->(. ,128) int32 target row (512 B each).
    row_bytes = 2 * C * itemsize + 4 * C + 2 * 512

    # Big tiles on 128-MiB-VMEM chips (v5e/v6e), ~half the budget on v7x.
    ws_budget = (8 << 20) if is_v7 else (16 << 20)

    if tile_m is None:
        tile_m = ws_budget // max(1, row_bytes)
    tile_m = min(int(tile_m), 8192, _round_up(N, pack))
    tile_m = max(pack, (tile_m // pack) * pack)

    num_tiles = pl.cdiv(N, tile_m)
    if num_cores is None:
        num_cores = _auto_num_tensorcores(kind)
    num_cores = max(1, min(int(num_cores), num_tiles))
    tiles_per_core = pl.cdiv(num_tiles, num_cores)
    need_guard = num_cores * tiles_per_core != num_tiles
    two_d = num_cores > 1

    target_2d = target.astype(jnp.int32).reshape(N, 1)

    if two_d:
        if need_guard:
            def lin_idx(c, j):
                # Keep the DMA block index inside the array; the overflow
                # iteration's compute is skipped inside the kernel.
                return jnp.minimum(c * tiles_per_core + j, num_tiles - 1)
        else:
            def lin_idx(c, j):
                return c * tiles_per_core + j

        grid = (num_cores, tiles_per_core)
        in_specs = [
            pl.BlockSpec((tile_m, C), lambda c, j: (lin_idx(c, j), 0)),
            pl.BlockSpec((tile_m, 1), lambda c, j: (lin_idx(c, j), 0)),
        ]
        out_spec = pl.BlockSpec((8, 128), lambda c, j: (c, 0))
        dim_sems = ("parallel", "arbitrary")
    else:
        grid = (num_tiles,)
        in_specs = [
            pl.BlockSpec((tile_m, C), lambda j: (j, 0)),
            pl.BlockSpec((tile_m, 1), lambda j: (j, 0)),
        ]
        out_spec = pl.BlockSpec((8, 128), lambda j: (0, 0))
        dim_sems = ("arbitrary",)

    # Accurate scoped-VMEM limit: real working set + headroom, capped for v7x.
    working = tile_m * row_bytes + 2 * 8 * 128 * 4
    cap = (32 << 20) if is_v7 else (64 << 20)
    vmem_limit = int(max(4 << 20, min(cap, working + (2 << 20))))

    kernel = functools.partial(
        _ce_kernel, n_rows=N, tiles_per_core=tiles_per_core, tile_m=tile_m,
        num_tiles=num_tiles, two_d=two_d, need_guard=need_guard)

    out = pl.pallas_call(
        kernel,
        out_shape=jax.ShapeDtypeStruct((num_cores * 8, 128), jnp.float32),
        grid_spec=pltpu.PrefetchScalarGridSpec(
            num_scalar_prefetch=0,
            grid=grid,
            in_specs=in_specs,
            out_specs=out_spec,
            scratch_shapes=[pltpu.VMEM((tile_m, C), jnp.int32)],
        ),
        compiler_params=pltpu.CompilerParams(
            dimension_semantics=dim_sems,
            vmem_limit_bytes=vmem_limit,
        ),
    )(logits, target_2d)  # native logits dtype; in-kernel upcast only for exp

    partials = out.reshape(num_cores, 8, 128)[:, 0, 0]
    return jnp.sum(partials) / jnp.float32(N)


class Model2:
    """JAX/Pallas port of the PyTorch Model2."""

    def __init__(self):
        self.labelweights = None  # None in the reference -> unweighted CE

    def forward(self, X_batch):
        raise NotImplementedError()

    def get_loss_depr(self, logits, target):
        # labelweights is None, so this is standard mean cross-entropy.
        return cross_entropy_loss(logits, target)


def _reference_ce(logits, target):
    lp = jax.nn.log_softmax(logits.astype(jnp.float32), axis=-1)
    return -jnp.mean(jnp.take_along_axis(lp, target[:, None], axis=-1))


if __name__ == "__main__":
    key = jax.random.PRNGKey(0)
    model = Model2()
    k1, k2, k3, k4 = jax.random.split(key, 4)

    # Test 1: small f32 case via the model API (auto tile / auto cores).
    N1, C1 = 64, 32
    logits1 = jax.random.normal(k1, (N1, C1), dtype=jnp.float32)
    target1 = jax.random.randint(k2, (N1,), 0, C1, dtype=jnp.int32)
    loss1 = model.get_loss_depr(logits1, target1)
    jax.block_until_ready(loss1)
    ref1 = _reference_ce(logits1, target1)
    assert jnp.allclose(loss1, ref1, atol=1e-5, rtol=1e-5), (loss1, ref1)

    # Test 2: bf16 logits, N not a multiple of the tile -> multi-step 1-D
    # grid, trailing-tile masking, native-dtype in-kernel math.
    N2, C2 = 70, 128
    logits2 = jax.random.normal(k3, (N2, C2), dtype=jnp.float32)
    target2 = jax.random.randint(k4, (N2,), 0, C2, dtype=jnp.int32)
    loss2 = cross_entropy_loss(logits2.astype(jnp.bfloat16), target2, tile_m=16)
    jax.block_until_ready(loss2)
    ref2 = _reference_ce(logits2.astype(jnp.bfloat16), target2)
    assert jnp.allclose(loss2, ref2, atol=2e-2, rtol=2e-2), (loss2, ref2)

    # Test 3: force the 2-core (v7x-style) 2-D grid path with a clamped
    # overflow tile (num_tiles=5, tiles_per_core=3) on f32 inputs.
    loss3 = cross_entropy_loss(logits2, target2, tile_m=16, num_cores=2)
    jax.block_until_ready(loss3)
    ref3 = _reference_ce(logits2, target2)
    assert jnp.allclose(loss3, ref3, atol=1e-5, rtol=1e-5), (loss3, ref3)

    print("KERNEL_OK")
</pallas_src>

<mosaic_0001>
module attributes {stable_mosaic.version = 11 : i64} {
  func.func @_ce_kernel(%arg0: i32, %arg1: memref<64x32xf32, #tpu.memory_space<vmem>>, %arg2: memref<64x1xi32, #tpu.memory_space<vmem>>, %arg3: memref<8x128xf32, #tpu.memory_space<vmem>>, %arg4: memref<64x32xi32, #tpu.memory_space<vmem>>) attributes {dimension_semantics = [#tpu.dimension_semantics<arbitrary>], iteration_bounds = array<i64: 1>, scalar_prefetch = 0 : i64, scratch_operands = 1 : i64, tpu.core_type = #tpu.core_type<tc>, window_params = [{transform_indices = @transform_0, window_bounds = array<i64: 64, 32>}, {transform_indices = @transform_1, window_bounds = array<i64: 64, 1>}, {pipeline_mode = #tpu.pipeline_mode<synchronous>, transform_indices = @transform_2, window_bounds = array<i64: 8, 128>}]} {
    %c0_i32 = arith.constant 0 : i32
    %0 = arith.cmpi eq, %arg0, %c0_i32 : i32
    %1 = arith.extui %0 : i1 to i32
    %c0_i32_0 = arith.constant 0 : i32
    %2 = arith.cmpi ne, %1, %c0_i32_0 : i32
    scf.if %2 {
      %cst_16 = arith.constant 0.000000e+00 : f32
      %38 = vector.broadcast %cst_16 : f32 to vector<8x128xf32>
      %c0_17 = arith.constant 0 : index
      %c0_18 = arith.constant 0 : index
      %39 = vector.load %arg3[%c0_17, %c0_18] : memref<8x128xf32, #tpu.memory_space<vmem>>, vector<8x128xf32>
      tpu.vector_store %arg3[%c0_17, %c0_18], %38 {strides = array<i32>} : memref<8x128xf32, #tpu.memory_space<vmem>>, vector<8x128xf32>,
      %40 = tpu.iota {dimensions = array<i32: 1>} : vector<64x32xi32>
      %c0_19 = arith.constant 0 : index
      %c0_20 = arith.constant 0 : index
      %41 = vector.load %arg4[%c0_19, %c0_20] : memref<64x32xi32, #tpu.memory_space<vmem>>, vector<64x32xi32>
      tpu.vector_store %arg4[%c0_19, %c0_20], %40 {strides = array<i32>} : memref<64x32xi32, #tpu.memory_space<vmem>>, vector<64x32xi32>,
    } else {
    }
    %c0 = arith.constant 0 : index
    %c0_1 = arith.constant 0 : index
    %3 = vector.load %arg1[%c0, %c0_1] : memref<64x32xf32, #tpu.memory_space<vmem>>, vector<64x32xf32>
    %c0_2 = arith.constant 0 : index
    %c0_3 = arith.constant 0 : index
    %4 = vector.load %arg2[%c0_2, %c0_3] : memref<64x1xi32, #tpu.memory_space<vmem>>, vector<64x1xi32>
    %c0_4 = arith.constant 0 : index
    %c0_5 = arith.constant 0 : index
    %5 = vector.load %arg4[%c0_4, %c0_5] : memref<64x32xi32, #tpu.memory_space<vmem>>, vector<64x32xi32>
    %cst = arith.constant dense<0xFF800000> : vector<64xf32>
    %6 = vector.multi_reduction <maximumf>, %3, %cst [1] : vector<64x32xf32> to vector<64xf32>
    %7 = vector.shape_cast %6 : vector<64xf32> to vector<64x1xf32>
    %8 = vector.broadcast %4 : vector<64x1xi32> to vector<64x32xi32>
    %9 = arith.cmpi eq, %5, %8 : vector<64x32xi32>
    %cst_6 = arith.constant 0.000000e+00 : f32
    %10 = vector.broadcast %cst_6 : f32 to vector<64x32xf32>
    %11 = arith.select %9, %3, %10 : vector<64x32xi1>, vector<64x32xf32>
    %cst_7 = arith.constant dense<0.000000e+00> : vector<64xf32>
    %12 = vector.multi_reduction <add>, %11, %cst_7 [1] : vector<64x32xf32> to vector<64xf32>
    %13 = vector.shape_cast %12 : vector<64xf32> to vector<64x1xf32>
    %14 = vector.broadcast %7 : vector<64x1xf32> to vector<64x32xf32>
    %15 = arith.subf %3, %14 : vector<64x32xf32>
    %16 = math.exp %15 : vector<64x32xf32>
    %cst_8 = arith.constant dense<0.000000e+00> : vector<64xf32>
    %17 = vector.multi_reduction <add>, %16, %cst_8 [1] : vector<64x32xf32> to vector<64xf32>
    %18 = vector.shape_cast %17 : vector<64xf32> to vector<64x1xf32>
    %19 = arith.subf %7, %13 : vector<64x1xf32>
    %20 = math.log %18 : vector<64x1xf32>
    %21 = arith.addf %19, %20 : vector<64x1xf32>
    %c64_i32 = arith.constant 64 : i32
    %22 = arith.muli %arg0, %c64_i32 : i32
    %23 = tpu.iota {dimensions = array<i32: 0>} : vector<64x1xi32>
    %24 = vector.broadcast %22 : i32 to vector<64x1xi32>
    %25 = arith.addi %24, %23 : vector<64x1xi32>
    %c64_i32_9 = arith.constant 64 : i32
    %26 = vector.broadcast %c64_i32_9 : i32 to vector<64x1xi32>
    %27 = arith.cmpi slt, %25, %26 : vector<64x1xi32>
    %cst_10 = arith.constant 0.000000e+00 : f32
    %28 = vector.broadcast %cst_10 : f32 to vector<64x1xf32>
    %29 = arith.select %27, %21, %28 : vector<64x1xi1>, vector<64x1xf32>
    %c0_11 = arith.constant 0 : index
    %c0_12 = arith.constant 0 : index
    %30 = vector.load %arg3[%c0_11, %c0_12] : memref<8x128xf32, #tpu.memory_space<vmem>>, vector<8x128xf32>
    %31 = vector.shape_cast %29 : vector<64x1xf32> to vector<1x64x1xf32>
    %cst_13 = arith.constant dense<0.000000e+00> : vector<1xf32>
    %32 = vector.multi_reduction <add>, %31, %cst_13 [1, 2] : vector<1x64x1xf32> to vector<1xf32>
    %33 = vector.shape_cast %32 : vector<1xf32> to vector<1x1x1xf32>
    %34 = vector.extract %33[0, 0, 0] : f32 from vector<1x1x1xf32>
    %35 = vector.broadcast %34 : f32 to vector<8x128xf32>
    %36 = arith.addf %30, %35 : vector<8x128xf32>
    %c0_14 = arith.constant 0 : index
    %c0_15 = arith.constant 0 : index
    %37 = vector.load %arg3[%c0_14, %c0_15] : memref<8x128xf32, #tpu.memory_space<vmem>>, vector<8x128xf32>
    tpu.vector_store %arg3[%c0_14, %c0_15], %36 {strides = array<i32>} : memref<8x128xf32, #tpu.memory_space<vmem>>, vector<8x128xf32>,
    return
  }
  func.func @transform_0(%arg0: i32) -> (i32, i32) {
    %c0_i32 = arith.constant 0 : i32
    %c0_i32_0 = arith.constant 0 : i32
    return %arg0, %c0_i32 : i32, i32
  }
  func.func @transform_1(%arg0: i32) -> (i32, i32) {
    %c0_i32 = arith.constant 0 : i32
    %c0_i32_0 = arith.constant 0 : i32
    return %arg0, %c0_i32 : i32, i32
  }
  func.func @transform_2(%arg0: i32) -> (i32, i32) {
    %c0_i32 = arith.constant 0 : i32
    %c0_i32_0 = arith.constant 0 : i32
    %c0_i32_1 = arith.constant 0 : i32
    return %c0_i32, %c0_i32_0 : i32, i32
  }
}

</mosaic_0001>

<bundles_post_ra>
// kernel: tpu_custom_call.1
= control target key start
LH: loop header
LB: loop body
LE: loop exit
PB: predicated region body
PF: predicated region fallthrough
CT: control target
= control target key end

     0   :  { %vm19_vm0 = vcmask 261120   ;;  %v362_v6 = vmov 0   ;;  %s551_s0 = inlined_call_operand.vmem [shape: f32[64,32], index: 0, kind: input, shape index: {}]   ;;  %s552_s1 = inlined_call_operand.vmem [shape: s32[64,1], index: 1, kind: input, shape index: {}]   ;;  %s553_s2 = inlined_call_operand.hbm [shape: f32[8,128], index: 2, kind: output, shape index: {}]  }
   0x1   :  { %v382_v0 = vld [vmem:[%s551_s0 + $0x10] sm:$0xff]  ;;  %v387_v1 = vld [vmem:[%s551_s0] sm:$0xff]  ;;  %v392_v2 = vld [vmem:[%s551_s0 + $0x18] sm:$0xff]  ;;  %305 = vset.pattern.permute.xlu1 %v362_v6  ;;  %304 = vset.pattern.permute.xlu0 %v362_v6 }
   0x2   :  { %v59_v3 = vsel %vm19_vm0, %v382_v0, -inf  ;;  %v53_v4 = vsel %vm19_vm0, %v387_v1, -inf  ;;  %v401_v5 = vld [vmem:[%s551_s0 + $0x8] sm:$0xff]  ;;  %v62_v7 = vsel %vm19_vm0, %v392_v2, -inf  ;;  %v415_v10 = vld [vmem:[%s551_s0 + $0x20] sm:$0xff] }
   0x3   :  { %60 = vmax.xlane.f32.xlu1 %v59_v3  ;;  %54 = vmax.xlane.f32.xlu0 %v53_v4  ;;  %v56_v8 = vsel %vm19_vm0, %v401_v5, -inf  ;;  %v410_v9 = vld [vmem:[%s551_s0 + $0x28] sm:$0xff] }
   0x4   :  { %7 = vsyncpa [#allocation4], 0  ;;  %v68_v11 = vsel %vm19_vm0, %v410_v9, -inf  ;;  %v65_v12 = vsel %vm19_vm0, %v415_v10, -inf  ;;  %v424_v13 = vld [vmem:[%s551_s0 + $0x38] sm:$0xff]  ;;  %v429_v14 = vld [vmem:[%s551_s0 + $0x30] sm:$0xff]  ;;  %v17_v17 = vlaneseq }
   0x5   :  { %v74_v15 = vsel %vm19_vm0, %v424_v13, -inf  ;;  %v71_v16 = vsel %vm19_vm0, %v429_v14, -inf  ;;  %v37_v19 = vld [vmem:[%s552_s1 + $0x8] sm:$0xff]  ;;  %v38_v20 = vld [vmem:[%s552_s1 + $0x10] sm:$0xff]  ;;  %v36_v21 = vld [vmem:[%s552_s1] sm:$0xff]  ;;  %vm257_vm9 = vcmask 7168  }
   0x6   :  { %v18_v18 = vand.u32 127, %v17_v17  ;;  %v39_v22 = vld [vmem:[%s552_s1 + $0x18] sm:$0xff]  ;;  %v40_v23 = vld [vmem:[%s552_s1 + $0x20] sm:$0xff]  ;;  %v41_v24 = vld [vmem:[%s552_s1 + $0x28] sm:$0xff] }
   0x7   :  { %63 = vmax.xlane.f32.xlu1 %v62_v7  ;;  %57 = vmax.xlane.f32.xlu0 %v56_v8  ;;  %v42_v25 = vld [vmem:[%s552_s1 + $0x30] sm:$0xff]  ;;  %v43_v26 = vld [vmem:[%s552_s1 + $0x38] sm:$0xff]  ;;  %s363_s1 = smov [#allocation3]  }
   0x8   :  { %21 = vst.msk [vmem:[#allocation2 + $0x8] sm:$0xff] %vm19_vm0, %v18_v18  ;;  %20 = vst.msk [vmem:[#allocation2] sm:$0xff] %vm19_vm0, %v18_v18  ;;  %s291_s12 = sshll.u32 %s363_s1, 4  ;;  %s292_s12 = int_to_ptr.vmem [resolvable:$true] %s291_s12 }
   0x9   :  { %22 = vst.msk [vmem:[#allocation2 + $0x10] sm:$0xff] %vm19_vm0, %v18_v18  ;;  %23 = vst.msk [vmem:[#allocation2 + $0x18] sm:$0xff] %vm19_vm0, %v18_v18  ;;  %s338_s14 = scalar_lea.vmem %s292_s12, 128  ;;  %p343_p1 = scmp.lt.s32.totalorder %s292_s12, %s292_s12 }
   0xa   :  { %24 = vst.msk [vmem:[#allocation2 + $0x20] sm:$0xff] %vm19_vm0, %v18_v18  ;;  %25 = vst.msk [vmem:[#allocation2 + $0x28] sm:$0xff] %vm19_vm0, %v18_v18  ;;  %p339_p0 = scmp.ne.s32.totalorder %s292_s12, %s338_s14  ;;  %p344_p2 = scmp.lt.s32.totalorder %s338_s14, %s338_s14 }
   0xb   :  { %69 = vmax.xlane.f32.xlu1 %v68_v11  ;;  %66 = vmax.xlane.f32.xlu0 %v65_v12  ;;  %26 = vst.msk [vmem:[#allocation2 + $0x30] sm:$0xff] %vm19_vm0, %v18_v18  ;;  %27 = vst.msk [vmem:[#allocation2 + $0x38] sm:$0xff] %vm19_vm0, %v18_v18 }
   0xc   :  { %p345_p3 = por %p344_p2, %p343_p1 }
   0xe   :  { %p346_p4 = pnand %p345_p3, %p339_p0 }
   0xf   :  { %75 = vmax.xlane.f32.xlu1 %v74_v15  ;;  %72 = vmax.xlane.f32.xlu0 %v71_v16  ;;  %v45_v47 = vld [vmem:[#allocation2 + $0x8] sm:$0xff]  ;;  %v44_v52 = vld [vmem:[#allocation2] sm:$0xff] }
  0x10   :  { %v47_v18 = vld [vmem:[#allocation2 + $0x18] sm:$0xff] }
  0x20   :  { %81 = vperm.xlu1 %305, %v37_v19   ;;  %v48_v19 = vld [vmem:[#allocation2 + $0x20] sm:$0xff] }
  0x24   :  { %84 = vperm.xlu1 %305, %v38_v20  }
  0x25   :  { %78 = vperm.xlu0 %304, %v36_v21  }
  0x28   :  { %87 = vperm.xlu1 %305, %v39_v22  }
  0x2c   :  { %90 = vperm.xlu1 %305, %v40_v23  }
  0x30   :  { %93 = vperm.xlu1 %305, %v41_v24  }
  0x34   :  { %96 = vperm.xlu1 %305, %v42_v25   ;;  %v49_v25 = vld [vmem:[#allocation2 + $0x28] sm:$0xff] }
  0x38   :  { %99 = vperm.xlu1 %305, %v43_v26   ;;  %v50_v26 = vld [vmem:[#allocation2 + $0x30] sm:$0xff] }
  0x90   :  { %v467_v27 = vpop.xlane.xlu1 %60  ;;  %v469_v28 = vpop.xlane.xlu0 %54 }
  0x91   :  { %v143_v31 = vsub.f32 %v382_v0, %v467_v27  ;;  %v141_v33 = vsub.f32 %v387_v1, %v469_v28 }
  0x93   :  { %v153_v37 = vmul.f32 1.442695, %v143_v31  ;;  %v149_v39 = vmul.f32 1.442695, %v141_v33 }
  0x94   :  { %v471_v29 = vpop.xlane.xlu1 %63  ;;  %v473_v30 = vpop.xlane.xlu0 %57 }
  0x95   :  { %v142_v32 = vsub.f32 %v401_v5, %v473_v30  ;;  %v144_v38 = vsub.f32 %v392_v2, %v471_v29 }
  0x97   :  { %v151_v34 = vmul.f32 1.442695, %v142_v32  ;;  %v155_v43 = vmul.f32 1.442695, %v144_v38  ;;  %v51_v38 = vld [vmem:[#allocation2 + $0x38] sm:$0xff] }
  0x98   :  { %v481_v35 = vpop.xlane.xlu1 %69  ;;  %v483_v36 = vpop.xlane.xlu0 %66 }
  0x99   :  { %306 = vpow2.f32 %v151_v34  ;;  %v145_v40 = vsub.f32 %v415_v10, %v483_v36  ;;  %v146_v44 = vsub.f32 %v410_v9, %v481_v35 }
  0x9a   :  { %308 = vpow2.f32 %v153_v37 }
  0x9b   :  { %310 = vpow2.f32 %v149_v39  ;;  %v157_v45 = vmul.f32 1.442695, %v145_v40  ;;  %v159_v49 = vmul.f32 1.442695, %v146_v44 }
  0x9c   :  { %v489_v41 = vpop.xlane.xlu1 %75  ;;  %v491_v42 = vpop.xlane.xlu0 %72  ;;  %312 = vpow2.f32 %v155_v43 }
  0x9d   :  { %v147_v46 = vsub.f32 %v429_v14, %v491_v42  ;;  %314 = vpow2.f32 %v157_v45  ;;  %v148_v50 = vsub.f32 %v424_v13, %v489_v41 }
  0x9e   :  { %316 = vpow2.f32 %v159_v49 }
  0x9f   :  { %v161_v51 = vmul.f32 1.442695, %v147_v46  ;;  %v163_v58 = vmul.f32 1.442695, %v148_v50 }
  0xa0   :  { %v82_v48 = vpop.permute.xlu1 %81 }
  0xa1   :  { %vm102_vm1 = vcmp.eq.s32.totalorder %v45_v47, %v82_v48  ;;  %318 = vpow2.f32 %v161_v51 }
  0xa2   :  { %v110_v53 = vsel %vm102_vm1, %v401_v5, 0.0  ;;  %320 = vpow2.f32 %v163_v58 }
  0xa3   :  { %v120_v54 = vsel %vm19_vm0, %v110_v53, 0.0  ;;  %v307_v55 = vpop.eup %306 }
  0xa4   :  { %v85_v56 = vpop.permute.xlu1 %84  ;;  %v79_v57 = vpop.permute.xlu0 %78  ;;  %121 = vadd.xlane.f32.xlu0 %v120_v54  ;;  %v168_v61 = vsel %vm19_vm0, %v307_v55, 0.0 }
  0xa5   :  { %vm101_vm2 = vcmp.eq.s32.totalorder %v44_v52, %v79_v57  ;;  %v309_v60 = vpop.eup %308 }
  0xa6   :  { %v109_v59 = vsel %vm101_vm2, %v387_v1, 0.0  ;;  %v311_v63 = vpop.eup %310  ;;  %v171_v5 = vsel %vm19_vm0, %v309_v60, 0.0  ;;  %v46_v1 = vld [vmem:[#allocation2 + $0x10] sm:$0xff] }
  0xa7   :  { %v117_v62 = vsel %vm19_vm0, %v109_v59, 0.0  ;;  %v313_v4 = vpop.eup %312  ;;  %v165_v6 = vsel %vm19_vm0, %v311_v63, 0.0  ;;  %vm103_vm3 = vcmp.eq.s32.totalorder %v46_v1, %v85_v56 }
  0xa8   :  { %v88_v3 = vpop.permute.xlu1 %87  ;;  %169 = vadd.xlane.f32.xlu0 %v168_v61  ;;  %118 = vadd.xlane.f32.xlu1 %v117_v62  ;;  %v315_v7 = vpop.eup %314  ;;  %v174_v15 = vsel %vm19_vm0, %v313_v4, 0.0  ;;  %v111_v24 = vsel %vm103_vm3, %v382_v0, 0.0 }
  0xa9   :  { %v317_v11 = vpop.eup %316  ;;  %v177_v12 = vsel %vm19_vm0, %v315_v7, 0.0  ;;  %vm104_vm4 = vcmp.eq.s32.totalorder %v47_v18, %v88_v3  ;;  %v123_v31 = vsel %vm19_vm0, %v111_v24, 0.0 }
  0xaa   :  { %v180_v21 = vsel %vm19_vm0, %v317_v11, 0.0  ;;  %v112_v34 = vsel %vm104_vm4, %v392_v2, 0.0 }
  0xab   :  { %v319_v16 = vpop.eup %318  ;;  %v126_v39 = vsel %vm19_vm0, %v112_v34, 0.0 }
  0xac   :  { %v91_v8 = vpop.permute.xlu1 %90  ;;  %172 = vadd.xlane.f32.xlu0 %v171_v5  ;;  %166 = vadd.xlane.f32.xlu1 %v165_v6  ;;  %v183_v20 = vsel %vm19_vm0, %v319_v16, 0.0  ;;  %v321_v22 = vpop.eup %320 }
  0xad   :  { %vm105_vm5 = vcmp.eq.s32.totalorder %v48_v19, %v91_v8  ;;  %v186_v32 = vsel %vm19_vm0, %v321_v22, 0.0 }
  0xae   :  { %v113_v33 = vsel %vm105_vm5, %v415_v10, 0.0 }
  0xaf   :  { %v129_v0 = vsel %vm19_vm0, %v113_v33, 0.0 }
  0xb0   :  { %v94_v17 = vpop.permute.xlu1 %93  ;;  %178 = vadd.xlane.f32.xlu0 %v177_v12  ;;  %175 = vadd.xlane.f32.xlu1 %v174_v15 }
  0xb1   :  { %vm106_vm6 = vcmp.eq.s32.totalorder %v49_v25, %v94_v17 }
  0xb2   :  { %v114_v43 = vsel %vm106_vm6, %v410_v9, 0.0 }
  0xb3   :  { %v132_v10 = vsel %vm19_vm0, %v114_v43, 0.0 }
  0xb4   :  { %v97_v23 = vpop.permute.xlu1 %96  ;;  %184 = vadd.xlane.f32.xlu0 %v183_v20  ;;  %181 = vadd.xlane.f32.xlu1 %v180_v21 }
  0xb5   :  { %vm107_vm7 = vcmp.eq.s32.totalorder %v50_v26, %v97_v23 }
  0xb6   :  { %v115_v40 = vsel %vm107_vm7, %v429_v14, 0.0 }
  0xb7   :  { %v135_v44 = vsel %vm19_vm0, %v115_v40, 0.0 }
  0xb8   :  { %124 = vadd.xlane.f32.xlu0 %v123_v31  ;;  %187 = vadd.xlane.f32.xlu1 %v186_v32  ;;  %v100_v37 = vpop.permute.xlu1 %99 }
  0xb9   :  { %vm108_vm8 = vcmp.eq.s32.totalorder %v51_v38, %v100_v37 }
  0xba   :  { %v116_v2 = vsel %vm108_vm8, %v424_v13, 0.0 }
  0xbb   :  { %v138_v45 = vsel %vm19_vm0, %v116_v2, 0.0 }
  0xbc   :  { %130 = vadd.xlane.f32.xlu0 %v129_v0  ;;  %127 = vadd.xlane.f32.xlu1 %v126_v39 }
  0xc0   :  { %136 = vadd.xlane.f32.xlu0 %v135_v44  ;;  %133 = vadd.xlane.f32.xlu1 %v132_v10 }
  0xc4   :  { %139 = vadd.xlane.f32.xlu1 %v138_v45 }
 0x131   :  { %v122_v46 = vpop.xlane.xlu0 %121 }
 0x132   :  { %v190_v13 = vsub.f32 %v473_v30, %v122_v46 }
 0x135   :  { %v170_v47 = vpop.xlane.xlu0 %169  ;;  %v119_v48 = vpop.xlane.xlu1 %118 }
 0x136   :  { %322 = vlog2.f32 %v170_v47  ;;  %v189_v61 = vsub.f32 %v469_v28, %v119_v48 }
 0x139   :  { %v173_v49 = vpop.xlane.xlu0 %172  ;;  %v167_v14 = vpop.xlane.xlu1 %166 }
 0x13a   :  { %324 = vlog2.f32 %v173_v49 }
 0x13b   :  { %326 = vlog2.f32 %v167_v14 }
 0x13d   :  { %v179_v9 = vpop.xlane.xlu0 %178  ;;  %v176_v50 = vpop.xlane.xlu1 %175 }
 0x13e   :  { %328 = vlog2.f32 %v179_v9 }
 0x13f   :  { %330 = vlog2.f32 %v176_v50 }
 0x140   :  { %v323_v51 = vpop.eup %322 }
 0x141   :  { %v200_v52 = vmul.f32 0.6931472, %v323_v51  ;;  %v185_v53 = vpop.xlane.xlu0 %184  ;;  %v182_v54 = vpop.xlane.xlu1 %181 }
 0x142   :  { %332 = vlog2.f32 %v185_v53 }
 0x143   :  { %334 = vlog2.f32 %v182_v54  ;;  %v214_v57 = vadd.f32 %v200_v52, %v190_v13 }
 0x144   :  { %v325_v55 = vpop.eup %324 }
 0x145   :  { %v327_v56 = vpop.eup %326  ;;  %v202_v58 = vmul.f32 0.6931472, %v325_v55  ;;  %v125_v59 = vpop.xlane.xlu0 %124  ;;  %v259_v30 = vsel %vm257_vm9, %v214_v57, 0.0 }
 0x146   :  { %v188_v60 = vpop.xlane.xlu1 %187  ;;  %v198_v62 = vmul.f32 0.6931472, %v327_v56  ;;  %v191_v63 = vsub.f32 %v467_v27, %v125_v59 }
 0x147   :  { %336 = vlog2.f32 %v188_v60 }
 0x148   :  { %v329_v3 = vpop.eup %328  ;;  %v213_v4 = vadd.f32 %v198_v62, %v189_v61  ;;  %v215_v5 = vadd.f32 %v202_v58, %v191_v63 }
 0x149   :  { %v331_v6 = vpop.eup %330  ;;  %v206_v7 = vmul.f32 0.6931472, %v329_v3  ;;  %v131_v8 = vpop.xlane.xlu0 %130 }
 0x14a   :  { %v128_v1 = vpop.xlane.xlu1 %127  ;;  %v258_v11 = vsel %vm257_vm9, %v213_v4, 0.0  ;;  %v204_v12 = vmul.f32 0.6931472, %v331_v6  ;;  %v261_v15 = vsel %vm257_vm9, %v215_v5, 0.0  ;;  %v193_v28 = vsub.f32 %v483_v36, %v131_v8 }
 0x14b   :  { %v260_v16 = vadd.f32 %v259_v30, %v258_v11  ;;  %v192_v27 = vsub.f32 %v471_v29, %v128_v1 }
 0x14c   :  { %v333_v17 = vpop.eup %332  ;;  %v217_v21 = vadd.f32 %v206_v7, %v193_v28 }
 0x14d   :  { %v335_v18 = vpop.eup %334  ;;  %v210_v19 = vmul.f32 0.6931472, %v333_v17  ;;  %v262_v20 = vadd.f32 %v261_v15, %v260_v16  ;;  %v216_v22 = vadd.f32 %v204_v12, %v192_v27  ;;  %v137_v23 = vpop.xlane.xlu0 %136 }
 0x14e   :  { %v134_v24 = vpop.xlane.xlu1 %133  ;;  %v208_v25 = vmul.f32 0.6931472, %v335_v18  ;;  %v195_v26 = vsub.f32 %v491_v42, %v137_v23  ;;  %v265_v29 = vsel %vm257_vm9, %v217_v21, 0.0 }
 0x14f   :  { %v194_v31 = vsub.f32 %v481_v35, %v134_v24  ;;  %v263_v32 = vsel %vm257_vm9, %v216_v22, 0.0 }
 0x150   :  { %v264_v36 = vadd.f32 %v263_v32, %v262_v20  ;;  %v219_v38 = vadd.f32 %v210_v19, %v195_v26 }
 0x151   :  { %v337_v33 = vpop.eup %336  ;;  %v218_v34 = vadd.f32 %v208_v25, %v194_v31 }
 0x152   :  { %v212_v37 = vmul.f32 0.6931472, %v337_v33  ;;  %v140_v0 = vpop.xlane.xlu1 %139  ;;  %v266_v43 = vadd.f32 %v265_v29, %v264_v36  ;;  %v269_v42 = vsel %vm257_vm9, %v219_v38, 0.0 }
 0x153   :  { %v267_v39 = vsel %vm257_vm9, %v218_v34, 0.0  ;;  %v196_v40 = vsub.f32 %v489_v41, %v140_v0 }
 0x154   :  { %v268_v10 = vadd.f32 %v267_v39, %v266_v43 }
 0x155   :  { %v220_v44 = vadd.f32 %v212_v37, %v196_v40 }
 0x156   :  { %v270_v35 = vadd.f32 %v269_v42, %v268_v10 }
 0x157   :  { %v271_v2 = vsel %vm257_vm9, %v220_v44, 0.0 }
 0x158   :  { %v272_v45 = vadd.f32 %v271_v2, %v270_v35 }
 0x15a   :  { %273 = vadd.xlane.f32.xlu0 %v272_v45 }
 0x1e7   :  { %v274_v46 = vpop.xlane.xlu0 %273 }
 0x1e8   :  { %v275_v47 = vrot.slane %v274_v46, 4 }
 0x1ea   :  { %v276_v48 = vadd.f32 %v275_v47, %v274_v46 }
 0x1ec   :  { %v277_v49 = vrot.slane %v276_v48, 2 }
 0x1ee   :  { %v278_v14 = vadd.f32 %v277_v49, %v276_v48 }
 0x1f0   :  { %v279_v9 = vrot.slane %v278_v14, 1 }
 0x1f2   :  { %v280_v50 = vadd.f32 %v279_v9, %v278_v14 }
 0x1f4   :  { %299 = vpush %v280_v50 }
 0x225   :  { %s300_s13 = spop %299 }
 0x226   :  { %v282_v41 = vstv %s300_s13 }
 0x227   :  { %284 = vst [vmem:[#allocation3] sm:$0xff] %v282_v41 }
 0x228   :  { %349 = shalt.err (!%p346_p4)
}
 0x229   :  { %s350_s17 = scalar_lea.hbm %s553_s2, 128 }
 0x22a   :  { %p351_p5 = scmp.ne.s32.totalorder %s553_s2, %s350_s17  ;;  %p354_p6 = scmp.lt.u32.totalorder %s350_s17, %s553_s2 }
 0x22c   :  { %p356_p7 = pnand %p354_p6, %p351_p5 }
 0x22e   :  { %359 = shalt.err (!%p356_p7)
}
 0x22f   :  { %294 = dma.vmem_to_hbm [thread:$0]  %s292_s12, 128, %s553_s2, [#allocation4]  }
 0x230   :  { %360 = dma.done.wait [#allocation4], 128  }
 0x231   :  { %361 = vsyncadd [#allocation4], 4294967168 }
 0x232   :  { %298 = vsyncpa [#allocation4], 1 }

</bundles_post_ra>
